<compile_context>
chip_gen: v7x
topology: tpu7x:2x2x1
jax: 0.10.0
libtpu: 0.0.40
codegen_flags: <defaults>
</compile_context>

<pallas_src>
import functools

import jax
import jax.numpy as jnp
from jax import lax
from jax.experimental import pallas as pl
from jax.experimental.pallas import tpu as pltpu


def _rmsnorm_kernel(x_ref, w_ref, o_ref, *, eps, inv_hidden):
    # x_ref: (tile_rows, hidden), w_ref: (1, hidden), o_ref: (tile_rows, hidden)
    # First read of x: fused into the sum-of-squares reduction.
    xf = x_ref[...].astype(jnp.float32)
    ms = jnp.sum(xf * xf, axis=-1, keepdims=True) * inv_hidden  # mean(x^2)
    inv = lax.rsqrt(ms + eps)                                   # EUP rsqrt
    # Second read of x: re-load from VMEM (vld slots have huge slack in an
    # HBM-bound kernel) rather than keeping a tile-sized f32 copy of x live
    # across the reduction -- that temp would be the largest VMEM consumer.
    o_ref[...] = (
        w_ref[...].astype(jnp.float32)
        * (x_ref[...].astype(jnp.float32) * inv)
    ).astype(o_ref.dtype)


def _cdiv(a, b):
    return -(-a // b)


def _round_up(x, m):
    return ((x + m - 1) // m) * m


def _vmem_capacity_bytes():
    """Physical per-TensorCore VMEM; conservative (v7x) fallback if unknown."""
    try:
        cap = getattr(pltpu.get_tpu_info(), "vmem_capacity_bytes", None)
        if cap:
            return int(cap)
    except Exception:
        pass
    return 64 * 1024 * 1024


def _pick_tile_rows(rows, hidden, in_dtype, out_dtype):
    """Pick the row-tile size.

    As large as the per-generation VMEM budget allows (dtype-aware), then
    adjusted so the 1-D grid has an EVEN number of near-equal blocks -- with
    dimension_semantics=("parallel",) the grid is sharded across v7x's two
    TensorCores, so an even balanced grid keeps both cores busy.
    """
    in_b = jnp.dtype(in_dtype).itemsize
    out_b = jnp.dtype(out_dtype).itemsize
    # Per tile row: double-buffered input + double-buffered output HBM tiles
    # plus ~one f32 element of transient upcast/temporary.
    per_row_bytes = hidden * (2 * in_b + 2 * out_b + 4)
    # Generation-aware budget: ~1/4 of physical VMEM for this kernel's tiles
    # (v7x 64 MiB -> 16 MiB, v5e/v6e 128 MiB -> 32 MiB).  ~2-4 MiB f32 tiles
    # already sit at ~85% of the HBM roofline, so this is risk-free.
    budget = min(_vmem_capacity_bytes() // 4, 32 * 1024 * 1024)
    max_tile = max(8, budget // max(1, per_row_bytes))
    max_tile = min(max_tile, 2048)  # diminishing returns past ~2k rows

    # Sublane-packing granule: 8 for f32, 16 for bf16, 32 for int8/fp8.
    granule = max(8, 32 // max(1, min(in_b, out_b)))

    steps = _cdiv(rows, max_tile)
    if rows >= 256:
        steps = max(steps, 2)  # give both v7x TCs work on mid/large inputs
    if steps <= 1:
        return _round_up(rows, 8)
    if steps % 2:
        steps += 1  # even number of steps -> balanced split across 2 TCs

    tile = _round_up(_cdiv(rows, steps), granule)
    actual = _cdiv(rows, tile)
    if actual > 1 and actual % 2:
        # Rounding to the granule dropped a step and left an odd count; try
        # shrinking by one granule to restore an even, near-balanced grid.
        smaller = tile - granule
        if smaller >= granule and _cdiv(rows, smaller) % 2 == 0:
            tile = smaller
    return tile


def rmsnorm(x, weight, eps=1e-5, tile_rows=None):
    """RMSNorm over the last axis of x, scaled by `weight` (shape (hidden,))."""
    orig_shape = x.shape
    hidden = orig_shape[-1]
    rows = 1
    for d in orig_shape[:-1]:
        rows *= d
    x2d = x.reshape(rows, hidden)
    w2d = weight.reshape(1, hidden)

    if tile_rows is None:
        tile_rows = _pick_tile_rows(rows, hidden, x.dtype, x.dtype)

    grid = (_cdiv(rows, tile_rows),)  # partial tail block masked by Pallas

    kernel = functools.partial(
        _rmsnorm_kernel, eps=float(eps), inv_hidden=1.0 / float(hidden)
    )

    # Explicit, generation-aware scoped-VMEM limit (v5e default is only 16 MiB;
    # v7x has 64 MiB physical -> 48 MiB; 128-MiB parts -> 96 MiB).
    vmem_cap = _vmem_capacity_bytes()
    vmem_limit = min(vmem_cap - vmem_cap // 4, 96 * 1024 * 1024)

    out = pl.pallas_call(
        kernel,
        out_shape=jax.ShapeDtypeStruct((rows, hidden), x.dtype),
        grid_spec=pltpu.PrefetchScalarGridSpec(
            num_scalar_prefetch=0,
            grid=grid,
            in_specs=[
                pl.BlockSpec((tile_rows, hidden), lambda i: (i, 0)),
                pl.BlockSpec((1, hidden), lambda i: (0, 0)),  # resident weight
            ],
            out_specs=pl.BlockSpec((tile_rows, hidden), lambda i: (i, 0)),
        ),
        compiler_params=pltpu.CompilerParams(
            dimension_semantics=("parallel",),
            vmem_limit_bytes=int(vmem_limit),
        ),
    )(x2d, w2d)

    return out.reshape(orig_shape)


def _ref_rmsnorm(x, weight, eps):
    xf = x.astype(jnp.float32)
    ms = jnp.mean(xf * xf, axis=-1, keepdims=True)
    return (weight.astype(jnp.float32) * (xf * lax.rsqrt(ms + eps))).astype(x.dtype)


if __name__ == "__main__":
    key = jax.random.PRNGKey(0)
    eps = 1e-5

    # Test 1: small shape consistent with the module (batch=2, seq=8, hidden=32).
    batch, seq, hidden = 2, 8, 32
    x = jax.random.normal(key, (batch, seq, hidden), dtype=jnp.float32)
    weight = jnp.ones((hidden,), dtype=jnp.float32)  # nn.Parameter(torch.ones(dims))
    y = jax.block_until_ready(rmsnorm(x, weight, eps=eps))
    y_ref = _ref_rmsnorm(x, weight, eps)
    assert y.shape == x.shape
    assert jnp.allclose(y, y_ref, atol=1e-5, rtol=1e-5), "mismatch vs reference (test 1)"

    # Test 2: lane-dense hidden (multiple of 128) and rows not divisible by the
    # tile, exercising the masked partial tail block.
    b2, s2, h2 = 3, 5, 256
    k1, k2 = jax.random.split(key)
    x2 = jax.random.normal(k1, (b2, s2, h2), dtype=jnp.float32)
    w2 = 1.0 + 0.1 * jax.random.normal(k2, (h2,), dtype=jnp.float32)
    y2 = jax.block_until_ready(rmsnorm(x2, w2, eps=eps))
    y2_ref = _ref_rmsnorm(x2, w2, eps)
    assert y2.shape == x2.shape
    assert jnp.allclose(y2, y2_ref, atol=1e-5, rtol=1e-5), "mismatch vs reference (test 2)"

    # Test 3: bf16 input exercising the dtype-aware tile sizing / f32 accumulation.
    x3 = jax.random.normal(k2, (4, 16, 128), dtype=jnp.float32).astype(jnp.bfloat16)
    w3 = jnp.ones((128,), dtype=jnp.bfloat16)
    y3 = jax.block_until_ready(rmsnorm(x3, w3, eps=eps))
    y3_ref = _ref_rmsnorm(x3, w3, eps)
    assert y3.shape == x3.shape
    assert jnp.allclose(
        y3.astype(jnp.float32), y3_ref.astype(jnp.float32), atol=2e-2, rtol=2e-2
    ), "mismatch vs reference (test 3)"

    print("KERNEL_OK")
</pallas_src>

<mosaic_0001>
module attributes {stable_mosaic.version = 11 : i64} {
  func.func @_rmsnorm_kernel(%arg0: i32, %arg1: memref<16x32xf32, #tpu.memory_space<vmem>>, %arg2: memref<1x32xf32, #tpu.memory_space<vmem>>, %arg3: memref<16x32xf32, #tpu.memory_space<vmem>>) attributes {dimension_semantics = [#tpu.dimension_semantics<parallel>], iteration_bounds = array<i64: 1>, scalar_prefetch = 0 : i64, scratch_operands = 0 : i64, tpu.core_type = #tpu.core_type<tc>, window_params = [{transform_indices = @transform_0, window_bounds = array<i64: 16, 32>}, {pipeline_mode = #tpu.pipeline_mode<synchronous>, transform_indices = @transform_1, window_bounds = array<i64: 1, 32>}, {transform_indices = @transform_2, window_bounds = array<i64: 16, 32>}]} {
    %c0 = arith.constant 0 : index
    %c0_0 = arith.constant 0 : index
    %0 = vector.load %arg1[%c0, %c0_0] : memref<16x32xf32, #tpu.memory_space<vmem>>, vector<16x32xf32>
    %1 = arith.mulf %0, %0 : vector<16x32xf32>
    %cst = arith.constant dense<0.000000e+00> : vector<16xf32>
    %2 = vector.multi_reduction <add>, %1, %cst [1] : vector<16x32xf32> to vector<16xf32>
    %3 = vector.shape_cast %2 : vector<16xf32> to vector<16x1xf32>
    %cst_1 = arith.constant 3.125000e-02 : f32
    %4 = vector.broadcast %cst_1 : f32 to vector<16x1xf32>
    %5 = arith.mulf %3, %4 : vector<16x1xf32>
    %cst_2 = arith.constant 9.99999974E-6 : f32
    %6 = vector.broadcast %cst_2 : f32 to vector<16x1xf32>
    %7 = arith.addf %5, %6 : vector<16x1xf32>
    %8 = math.rsqrt %7 : vector<16x1xf32>
    %c0_3 = arith.constant 0 : index
    %c0_4 = arith.constant 0 : index
    %9 = vector.load %arg2[%c0_3, %c0_4] : memref<1x32xf32, #tpu.memory_space<vmem>>, vector<1x32xf32>
    %c0_5 = arith.constant 0 : index
    %c0_6 = arith.constant 0 : index
    %10 = vector.load %arg1[%c0_5, %c0_6] : memref<16x32xf32, #tpu.memory_space<vmem>>, vector<16x32xf32>
    %11 = vector.broadcast %8 : vector<16x1xf32> to vector<16x32xf32>
    %12 = arith.mulf %10, %11 : vector<16x32xf32>
    %13 = vector.broadcast %9 : vector<1x32xf32> to vector<16x32xf32>
    %14 = arith.mulf %13, %12 : vector<16x32xf32>
    %c0_7 = arith.constant 0 : index
    %c0_8 = arith.constant 0 : index
    %15 = vector.load %arg3[%c0_7, %c0_8] : memref<16x32xf32, #tpu.memory_space<vmem>>, vector<16x32xf32>
    tpu.vector_store %arg3[%c0_7, %c0_8], %14 {strides = array<i32>} : memref<16x32xf32, #tpu.memory_space<vmem>>, vector<16x32xf32>,
    return
  }
  func.func @transform_0(%arg0: i32) -> (i32, i32) {
    %c0_i32 = arith.constant 0 : i32
    %c0_i32_0 = arith.constant 0 : i32
    return %arg0, %c0_i32 : i32, i32
  }
  func.func @transform_1(%arg0: i32) -> (i32, i32) {
    %c0_i32 = arith.constant 0 : i32
    %c0_i32_0 = arith.constant 0 : i32
    %c0_i32_1 = arith.constant 0 : i32
    return %c0_i32, %c0_i32_0 : i32, i32
  }
  func.func @transform_2(%arg0: i32) -> (i32, i32) {
    %c0_i32 = arith.constant 0 : i32
    %c0_i32_0 = arith.constant 0 : i32
    return %arg0, %c0_i32 : i32, i32
  }
}

</mosaic_0001>

<bundles_post_ra>
// kernel: tpu_custom_call.1
= control target key start
LH: loop header
LB: loop body
LE: loop exit
PB: predicated region body
PF: predicated region fallthrough
CT: control target
= control target key end

     0   :  { %7 = vsyncpa [#allocation3], 0  ;;  %s186_s0 = inlined_call_operand.hbm [shape: f32[16,32], index: 0, kind: input, shape index: {}]   ;;  %s187_s1 = inlined_call_operand.vmem [shape: f32[1,32], index: 1, kind: input, shape index: {}]   ;;  %s188_s2 = inlined_call_operand.hbm [shape: f32[16,32], index: 2, kind: output, shape index: {}]  }
   0x1   :  { %8 = vsyncpa [#allocation4], 0  ;;  %s130_s9 = smov [#allocation2]   ;;  %s82_s13 = scalar_lea.hbm %s186_s0, 256 }
   0x2   :  { %s14_s10 = sshll.u32 %s130_s9, 4  ;;  %p83_p0 = scmp.ne.s32.totalorder %s186_s0, %s82_s13  ;;  %s15_s10 = int_to_ptr.vmem [resolvable:$true] %s14_s10 }
   0x3   :  { %p86_p1 = scmp.lt.u32.totalorder %s82_s13, %s186_s0 }
   0x5   :  { %p88_p2 = pnand %p86_p1, %p83_p0 }
   0x7   :  { %91 = shalt.err (!%p88_p2)
}
   0x8   :  { %s92_s18 = scalar_lea.vmem %s15_s10, 256  ;;  %p97_p4 = scmp.lt.s32.totalorder %s15_s10, %s15_s10 }
   0x9   :  { %p93_p3 = scmp.ne.s32.totalorder %s15_s10, %s92_s18  ;;  %p98_p5 = scmp.lt.s32.totalorder %s92_s18, %s92_s18 }
   0xb   :  { %p99_p6 = por %p98_p5, %p97_p4 }
   0xd   :  { %p100_p7 = pnand %p99_p6, %p93_p3 }
   0xf   :  { %103 = shalt.err (!%p100_p7)
}
  0x10   :  { %s131_s19 = smov 128   ;;  %s132_s20 = smov 8  }
  0x11   :  { %20 = dma.hbm_to_vmem [thread:$0]  %s186_s0, 256, %s15_s10, [#allocation3], %s131_s19, %s131_s19, %s132_s20  }
  0x12   :  { %126 = dma.done.wait [#allocation3], 256  }
  0x13   :  { %127 = vsyncadd [#allocation3], 4294967040  ;;  %v26_v0 = vld [vmem:[#allocation2] sm:$0xff]  ;;  %vm30_vm0 = vcmask 261120   ;;  %v27_v1 = vld [vmem:[#allocation2 + $0x8] sm:$0xff]  ;;  %s133_s24 = smov [#allocation5]  }
  0x14   :  { %v28_v2 = vmul.f32 %v26_v0, %v26_v0  ;;  %v29_v3 = vmul.f32 %v27_v1, %v27_v1  ;;  %v73_v13 = vld [vmem:[%s187_s1] ss:$0 sm:$0xff]  ;;  %s61_s25 = sshll.u32 %s133_s24, 4  ;;  %s62_s25 = int_to_ptr.vmem [resolvable:$true] %s61_s25 }
  0x15   :  { %s104_s26 = scalar_lea.vmem %s62_s25, 256  ;;  %p109_p9 = scmp.lt.s32.totalorder %s62_s25, %s62_s25 }
  0x16   :  { %v31_v4 = vsel %vm30_vm0, %v28_v2, 0.0  ;;  %v34_v5 = vsel %vm30_vm0, %v29_v3, 0.0  ;;  %p105_p8 = scmp.ne.s32.totalorder %s62_s25, %s104_s26  ;;  %p110_p10 = scmp.lt.s32.totalorder %s104_s26, %s104_s26 }
  0x17   :  { %32 = vadd.xlane.f32.xlu0 %v31_v4 }
  0x18   :  { %p111_p11 = por %p110_p10, %p109_p9 }
  0x1a   :  { %p112_p12 = pnand %p111_p11, %p105_p8 }
  0x1b   :  { %35 = vadd.xlane.f32.xlu0 %v34_v5 }
  0xa4   :  { %v33_v6 = vpop.xlane.xlu0 %32 }
  0xa5   :  { %v37_v7 = vmul.f32 0.03125, %v33_v6 }
  0xa7   :  { %v39_v8 = vadd.f32 1e-05, %v37_v7 }
  0xa8   :  { %v36_v9 = vpop.xlane.xlu0 %35 }
  0xa9   :  { %78 = vrsqrt.f32 %v39_v8  ;;  %v38_v10 = vmul.f32 0.03125, %v36_v9 }
  0xab   :  { %v40_v11 = vadd.f32 1e-05, %v38_v10 }
  0xad   :  { %80 = vrsqrt.f32 %v40_v11 }
  0xb3   :  { %v79_v12 = vpop.eup %78 }
  0xb4   :  { %v44_v14 = vmul.f32 %v79_v12, %v26_v0 }
  0xb6   :  { %v52_v15 = vmul.f32 %v73_v13, %v44_v14 }
  0xb7   :  { %v81_v16 = vpop.eup %80 }
  0xb8   :  { %v45_v17 = vmul.f32 %v81_v16, %v27_v1  ;;  %54 = vst.msk [vmem:[#allocation5] sm:$0xff] %vm30_vm0, %v52_v15 }
  0xba   :  { %v53_v18 = vmul.f32 %v73_v13, %v45_v17 }
  0xbc   :  { %55 = vst.msk [vmem:[#allocation5 + $0x8] sm:$0xff] %vm30_vm0, %v53_v18 }
  0xbd   :  { %115 = shalt.err (!%p112_p12)
}
  0xbe   :  { %s116_s28 = scalar_lea.hbm %s188_s2, 256 }
  0xbf   :  { %p117_p13 = scmp.ne.s32.totalorder %s188_s2, %s116_s28  ;;  %p120_p0 = scmp.lt.u32.totalorder %s116_s28, %s188_s2 }
  0xc1   :  { %p122_p1 = pnand %p120_p0, %p117_p13 }
  0xc3   :  { %125 = shalt.err (!%p122_p1)
}
  0xc4   :  { %67 = dma.vmem_to_hbm [thread:$0]  %s62_s25, 256, %s188_s2, [#allocation4], %s131_s19, %s131_s19, %s132_s20  }
  0xc5   :  { %128 = dma.done.wait [#allocation4], 256  }
  0xc6   :  { %129 = vsyncadd [#allocation4], 4294967040 }
  0xc7   :  { %71 = vsyncpa [#allocation3], 1 }
  0xc8   :  { %72 = vsyncpa [#allocation4], 1 }

</bundles_post_ra>
